<compile_context>
chip_gen: v7x
topology: tpu7x:2x2x1
jax: 0.10.0
libtpu: 0.0.40
codegen_flags: <defaults>
</compile_context>

<pallas_src>
import functools

import jax
import jax.numpy as jnp
from jax import lax
from jax.experimental import pallas as pl
from jax.experimental.pallas import tpu as pltpu

EPS = 1e-5
MXU_DTYPE = jnp.bfloat16   # set to jnp.float32 to bit-match the f32 reference
                           # (costs ~3x vmatmul passes on v5e/v6e/v7x)


def _bn_stats(h):
    """Single-pass batch statistics: mean and rsqrt(var + eps) (biased var, f32)."""
    inv_n = 1.0 / h.shape[0]
    s = jnp.sum(h, axis=0, keepdims=True)
    ss = jnp.sum(h * h, axis=0, keepdims=True)
    mean = s * inv_n
    var = ss * inv_n - mean * mean
    return mean, lax.rsqrt(var + EPS)


def mlp_score_kernel(t_ref, x_ref, w_ref, p_ref, out_ref, cat_ref, *, d_in, H, T):
    """Fused forward.  w_ref: bf16 weight slab, p_ref: f32 bias/BN slab,
    cat_ref: persistent (B, 2H) bf16 scratch for the fused block operand."""
    B = x_ref.shape[0]

    # ---- static row offsets into the bf16 weight slab ----
    o_ttab = 0                     # (T, H)   folded time-embedding table
    o_head = o_ttab + T            # (d_in,H) head weight
    o_f0 = o_head + d_in           # (2H, H)  blk0: vstack(W_block1, W_temp)
    o_f1 = o_f0 + 2 * H            # (2H, H)  blk1: vstack(W_block1, W_temp)
    o_w2 = o_f1 + 2 * H            # (H, H)x2 blk0/blk1 block2 weights
    o_tail = o_w2 + 2 * H          # (H, d_in) tail weight

    # ---- small-param slab rows (f32): ----
    #   0: head_b | 1..2: fused_b (blk0, blk1) | 3..4: b2 (blk0, blk1)
    #   5..11: BN gamma [blk0.b1, blk0.temp, blk0.b2, blk1.b1, blk1.temp, blk1.b2, tail]
    #   12..18: BN beta (same order) | 19: tail_b
    def bn_g(j):
        return p_ref[5 + j:6 + j, :H]

    def bn_be(j):
        return p_ref[12 + j:13 + j, :H]

    # ---- time embedding: exact one-hot select of the folded (T, H) table ----
    # one-hot is exact 0/1 in bf16; out-of-range t yields a zero embedding.
    t = t_ref[...]                                                 # (B, 1) int32
    col = lax.broadcasted_iota(jnp.int32, (B, T), 1)
    onehot = (col == t).astype(MXU_DTYPE)
    temb = jnp.dot(onehot, w_ref[o_ttab:o_head, :H],
                   preferred_element_type=jnp.float32)             # (B, H)

    # temb BN statistics are identical across blocks -> hoist out of the loop.
    mean_t, rstd_t = _bn_stats(temb)
    tn = (temb - mean_t) * rstd_t

    # ---- head: x @ W_head + b ----
    h = jnp.dot(x_ref[...].astype(MXU_DTYPE), w_ref[o_head:o_f0, :H],
                preferred_element_type=jnp.float32) + p_ref[0:1, :H]

    # ---- two MLPBlocks ----
    for blk in range(2):
        i = 3 * blk
        # BN(h) -> ReLU (folded scale/shift) -> left half of scratch
        mean_h, rstd_h = _bn_stats(h)
        scale = bn_g(i) * rstd_h
        shift = bn_be(i) - mean_h * scale
        cat_ref[:, :H] = jnp.maximum(h * scale + shift, 0.0).astype(cat_ref.dtype)
        # BN(temb) -> ReLU (hoisted stats; per-block gamma/beta) -> right half
        cat_ref[:, H:] = jnp.maximum(tn * bn_g(i + 1) + bn_be(i + 1),
                                     0.0).astype(cat_ref.dtype)
        # Fused block1 + temp_proj matmul along K: (B, 2H) @ (2H, H)
        fo = o_f0 + blk * 2 * H
        h1 = jnp.dot(cat_ref[...], w_ref[fo:fo + 2 * H, :H],
                     preferred_element_type=jnp.float32) + p_ref[1 + blk:2 + blk, :H]
        # block2: BN -> ReLU -> Linear
        mean1, rstd1 = _bn_stats(h1)
        scale = bn_g(i + 2) * rstd1
        shift = bn_be(i + 2) - mean1 * scale
        a1 = jnp.maximum(h1 * scale + shift, 0.0).astype(MXU_DTYPE)
        wo = o_w2 + blk * H
        h = jnp.dot(a1, w_ref[wo:wo + H, :H],
                    preferred_element_type=jnp.float32) + p_ref[3 + blk:4 + blk, :H]

    # ---- tail: BN -> ReLU -> Linear ----
    mean, rstd = _bn_stats(h)
    scale = p_ref[11:12, :H] * rstd
    shift = p_ref[18:19, :H] - mean * scale
    a = jnp.maximum(h * scale + shift, 0.0).astype(MXU_DTYPE)
    out = jnp.dot(a, w_ref[o_tail:o_tail + H, :d_in],
                  preferred_element_type=jnp.float32) + p_ref[19:20, :d_in]
    out_ref[...] = out.astype(out_ref.dtype)


def init_params(key, d_in, hidden, T):
    """Deterministic synthetic parameter init (PyTorch-like uniform for linears)."""
    ks = jax.random.split(key, 11)

    def lin(k, fan_in, fan_out):
        bound = 1.0 / (fan_in ** 0.5)
        kw, kb = jax.random.split(k)
        w = jax.random.uniform(kw, (fan_in, fan_out), jnp.float32, -bound, bound)
        b = jax.random.uniform(kb, (1, fan_out), jnp.float32, -bound, bound)
        return w, b

    p = {}
    p['emb'] = jax.random.normal(ks[0], (T, d_in), jnp.float32)
    p['te_w1'], p['te_b1'] = lin(ks[1], d_in, hidden)
    p['te_w2'], p['te_b2'] = lin(ks[2], hidden, hidden)
    p['head_w'], p['head_b'] = lin(ks[3], d_in, hidden)

    blk_w, blk_b = [], []
    for i in range(6):     # block1.{block1,temp_proj,block2}, block2.{...}
        w, b = lin(ks[4 + i], hidden, hidden)
        blk_w.append(w)
        blk_b.append(b[0])
    p['blk_w'] = jnp.stack(blk_w)                      # (6, H, H)
    p['blk_b'] = jnp.stack(blk_b)                      # (6, H)
    p['blk_g'] = jnp.ones((6, hidden), jnp.float32)    # BN gamma init
    p['blk_be'] = jnp.zeros((6, hidden), jnp.float32)  # BN beta init

    p['tail_g'] = jnp.ones((1, hidden), jnp.float32)
    p['tail_be'] = jnp.zeros((1, hidden), jnp.float32)
    p['tail_w'], p['tail_b'] = lin(ks[10], hidden, d_in)
    return p


def pack_params(params, mxu_dtype=MXU_DTYPE):
    """Fold / restack module params into two VMEM slabs.  Call ONCE at init;
    reuse the returned slabs for every forward call (the folding is a pure
    function of the parameters)."""
    d_in, H = params['head_w'].shape
    T = params['emb'].shape[0]
    Wc = max(H, d_in)

    def padc(a):
        a = jnp.atleast_2d(a)
        return jnp.pad(a, ((0, 0), (0, Wc - a.shape[1])))

    # Time-embedding MLP (Embedding->Linear->ReLU->Linear) folded into a (T,H) table.
    tab = jnp.maximum(params['emb'] @ params['te_w1'] + params['te_b1'], 0.0)
    tab = tab @ params['te_w2'] + params['te_b2']

    W, b = params['blk_w'], params['blk_b']            # (6,H,H), (6,H)
    w_rows = [tab, params['head_w'],
              jnp.concatenate([W[0], W[1]], axis=0),   # blk0 fused (2H,H)
              jnp.concatenate([W[3], W[4]], axis=0),   # blk1 fused (2H,H)
              W[2], W[5],                              # block2 weights
              params['tail_w']]
    wslab = jnp.concatenate([padc(a) for a in w_rows], axis=0).astype(mxu_dtype)

    p_rows = [params['head_b'],
              (b[0] + b[1])[None], (b[3] + b[4])[None],   # fused biases
              b[2][None], b[5][None],                     # block2 biases
              params['blk_g'], params['tail_g'],          # BN gamma (7 rows)
              params['blk_be'], params['tail_be'],        # BN beta  (7 rows)
              params['tail_b']]
    pslab = jnp.concatenate([padc(a) for a in p_rows], axis=0).astype(jnp.float32)

    return wslab, pslab, dict(d_in=d_in, hidden=H, T=T)


@functools.partial(jax.jit, static_argnames=("hidden", "T"))
def mlp_score_forward(x, t, wslab, pslab, *, hidden, T):
    B, d_in = x.shape
    H = hidden
    t2 = t.reshape(B, 1).astype(jnp.int32)

    flops = 2 * B * (T * H + d_in * H + 2 * (2 * H) * H + 2 * H * H + H * d_in)
    cost = pl.CostEstimate(
        flops=flops,
        transcendentals=6 * H,  # rsqrt per BN feature (temb stats hoisted)
        bytes_accessed=(x.size * 4 + B * 4 + wslab.size * 2 + pslab.size * 4
                        + B * d_in * 4))

    kernel = functools.partial(mlp_score_kernel, d_in=d_in, H=H, T=T)
    return pl.pallas_call(
        kernel,
        out_shape=jax.ShapeDtypeStruct((B, d_in), jnp.float32),
        in_specs=[pl.BlockSpec(memory_space=pltpu.MemorySpace.VMEM)] * 4,
        out_specs=pl.BlockSpec(memory_space=pltpu.MemorySpace.VMEM),
        scratch_shapes=[pltpu.VMEM((B, 2 * H), MXU_DTYPE)],
        cost_estimate=cost,
    )(t2, x, wslab, pslab)


def mlp_score_reference(x, t, params):
    """Pure-JAX f32 reference with the original (unfused) parameterization."""
    def bn_relu_lin(h, g, be, w, b):
        mean = jnp.mean(h, axis=0, keepdims=True)
        var = jnp.mean(jnp.square(h - mean), axis=0, keepdims=True)
        hn = (h - mean) * lax.rsqrt(var + EPS) * g + be
        hn = jnp.maximum(hn, 0.0)
        return hn @ w + b

    e = params['emb'][t]
    temb = jnp.maximum(e @ params['te_w1'] + params['te_b1'], 0.0)
    temb = temb @ params['te_w2'] + params['te_b2']
    h = x @ params['head_w'] + params['head_b']
    for blk in range(2):
        i0 = 3 * blk
        h1 = bn_relu_lin(h, params['blk_g'][i0:i0 + 1], params['blk_be'][i0:i0 + 1],
                         params['blk_w'][i0], params['blk_b'][i0:i0 + 1])
        h1 = h1 + bn_relu_lin(temb, params['blk_g'][i0 + 1:i0 + 2],
                              params['blk_be'][i0 + 1:i0 + 2],
                              params['blk_w'][i0 + 1], params['blk_b'][i0 + 1:i0 + 2])
        h = bn_relu_lin(h1, params['blk_g'][i0 + 2:i0 + 3],
                        params['blk_be'][i0 + 2:i0 + 3],
                        params['blk_w'][i0 + 2], params['blk_b'][i0 + 2:i0 + 3])
    return bn_relu_lin(h, params['tail_g'], params['tail_be'],
                       params['tail_w'], params['tail_b'])


if __name__ == "__main__":
    B, D_IN, HIDDEN, T = 8, 16, 32, 16

    key = jax.random.PRNGKey(0)
    kx, kt, kp = jax.random.split(key, 3)
    x = jax.random.normal(kx, (B, D_IN), jnp.float32)
    t = jax.random.randint(kt, (B,), 0, T, jnp.int32)
    params = init_params(kp, D_IN, HIDDEN, T)

    # Pack / fold params once; reuse the slabs on every (jitted) forward call.
    wslab, pslab, dims = pack_params(params)

    out = jax.block_until_ready(
        mlp_score_forward(x, t, wslab, pslab, hidden=dims['hidden'], T=dims['T']))
    assert out.shape == (B, D_IN), out.shape

    ref = jax.block_until_ready(mlp_score_reference(x, t, params))
    # Fully-bf16 MXU operands (incl. the folded time-embed table) with f32
    # accumulation + single-pass BN vs the f32 reference -> relaxed tolerance.
    assert jnp.allclose(out, ref, atol=5e-2, rtol=5e-2), "mismatch vs JAX reference"

    print("KERNEL_OK")
</pallas_src>

<mosaic_0001>
module attributes {stable_mosaic.version = 11 : i64} {
  func.func @mlp_score_kernel(%arg0: memref<8x1xi32, #tpu.memory_space<vmem>>, %arg1: memref<8x16xf32, #tpu.memory_space<vmem>>, %arg2: memref<256x32xbf16, #tpu.memory_space<vmem>>, %arg3: memref<20x32xf32, #tpu.memory_space<vmem>>, %arg4: memref<8x16xf32, #tpu.memory_space<vmem>>, %arg5: memref<8x64xbf16, #tpu.memory_space<vmem>>) attributes {dimension_semantics = [], scalar_prefetch = 0 : i64, scratch_operands = 1 : i64, tpu.core_type = #tpu.core_type<tc>} {
    %c0 = arith.constant 0 : index
    %c0_0 = arith.constant 0 : index
    %0 = vector.load %arg0[%c0, %c0_0] : memref<8x1xi32, #tpu.memory_space<vmem>>, vector<8x1xi32>
    %1 = tpu.iota {dimensions = array<i32: 1>} : vector<8x16xi32>
    %2 = vector.broadcast %0 : vector<8x1xi32> to vector<8x16xi32>
    %3 = arith.cmpi eq, %1, %2 : vector<8x16xi32>
    %4 = arith.extui %3 : vector<8x16xi1> to vector<8x16xi32>
    %5 = arith.sitofp %4 : vector<8x16xi32> to vector<8x16xf32>
    %6 = arith.truncf %5 : vector<8x16xf32> to vector<8x16xbf16>
    %c0_1 = arith.constant 0 : index
    %c0_2 = arith.constant 0 : index
    %7 = vector.load %arg2[%c0_1, %c0_2] : memref<256x32xbf16, #tpu.memory_space<vmem>>, vector<16x32xbf16>
    %cst = arith.constant dense<0.000000e+00> : vector<8x32xf32>
    %8 = tpu.matmul %6, %7, %cst {dimension_numbers = #tpu.dot_dimension_numbers<[1], [0], [0], [1], [0, 0, 1, 1], [], []>} : vector<8x16xbf16>, vector<16x32xbf16>, vector<8x32xf32> -> vector<8x32xf32>
    %cst_3 = arith.constant dense<0.000000e+00> : vector<32xf32>
    %9 = vector.multi_reduction <add>, %8, %cst_3 [0] : vector<8x32xf32> to vector<32xf32>
    %10 = vector.shape_cast %9 : vector<32xf32> to vector<1x32xf32>
    %11 = arith.mulf %8, %8 : vector<8x32xf32>
    %cst_4 = arith.constant dense<0.000000e+00> : vector<32xf32>
    %12 = vector.multi_reduction <add>, %11, %cst_4 [0] : vector<8x32xf32> to vector<32xf32>
    %13 = vector.shape_cast %12 : vector<32xf32> to vector<1x32xf32>
    %cst_5 = arith.constant 1.250000e-01 : f32
    %14 = vector.broadcast %cst_5 : f32 to vector<1x32xf32>
    %15 = arith.mulf %10, %14 : vector<1x32xf32>
    %cst_6 = arith.constant 1.250000e-01 : f32
    %16 = vector.broadcast %cst_6 : f32 to vector<1x32xf32>
    %17 = arith.mulf %13, %16 : vector<1x32xf32>
    %18 = arith.mulf %15, %15 : vector<1x32xf32>
    %19 = arith.subf %17, %18 : vector<1x32xf32>
    %cst_7 = arith.constant 9.99999974E-6 : f32
    %20 = vector.broadcast %cst_7 : f32 to vector<1x32xf32>
    %21 = arith.addf %19, %20 : vector<1x32xf32>
    %22 = math.rsqrt %21 : vector<1x32xf32>
    %23 = vector.broadcast %15 : vector<1x32xf32> to vector<8x32xf32>
    %24 = arith.subf %8, %23 : vector<8x32xf32>
    %25 = vector.broadcast %22 : vector<1x32xf32> to vector<8x32xf32>
    %26 = arith.mulf %24, %25 : vector<8x32xf32>
    %c0_8 = arith.constant 0 : index
    %c0_9 = arith.constant 0 : index
    %27 = vector.load %arg1[%c0_8, %c0_9] : memref<8x16xf32, #tpu.memory_space<vmem>>, vector<8x16xf32>
    %28 = arith.truncf %27 : vector<8x16xf32> to vector<8x16xbf16>
    %c16 = arith.constant 16 : index
    %c0_10 = arith.constant 0 : index
    %29 = vector.load %arg2[%c16, %c0_10] : memref<256x32xbf16, #tpu.memory_space<vmem>>, vector<16x32xbf16>
    %cst_11 = arith.constant dense<0.000000e+00> : vector<8x32xf32>
    %30 = tpu.matmul %28, %29, %cst_11 {dimension_numbers = #tpu.dot_dimension_numbers<[1], [0], [0], [1], [0, 0, 1, 1], [], []>} : vector<8x16xbf16>, vector<16x32xbf16>, vector<8x32xf32> -> vector<8x32xf32>
    %c0_12 = arith.constant 0 : index
    %c0_13 = arith.constant 0 : index
    %31 = vector.load %arg3[%c0_12, %c0_13] : memref<20x32xf32, #tpu.memory_space<vmem>>, vector<1x32xf32>
    %32 = vector.broadcast %31 : vector<1x32xf32> to vector<8x32xf32>
    %33 = arith.addf %30, %32 : vector<8x32xf32>
    %cst_14 = arith.constant dense<0.000000e+00> : vector<32xf32>
    %34 = vector.multi_reduction <add>, %33, %cst_14 [0] : vector<8x32xf32> to vector<32xf32>
    %35 = vector.shape_cast %34 : vector<32xf32> to vector<1x32xf32>
    %36 = arith.mulf %33, %33 : vector<8x32xf32>
    %cst_15 = arith.constant dense<0.000000e+00> : vector<32xf32>
    %37 = vector.multi_reduction <add>, %36, %cst_15 [0] : vector<8x32xf32> to vector<32xf32>
    %38 = vector.shape_cast %37 : vector<32xf32> to vector<1x32xf32>
    %cst_16 = arith.constant 1.250000e-01 : f32
    %39 = vector.broadcast %cst_16 : f32 to vector<1x32xf32>
    %40 = arith.mulf %35, %39 : vector<1x32xf32>
    %cst_17 = arith.constant 1.250000e-01 : f32
    %41 = vector.broadcast %cst_17 : f32 to vector<1x32xf32>
    %42 = arith.mulf %38, %41 : vector<1x32xf32>
    %43 = arith.mulf %40, %40 : vector<1x32xf32>
    %44 = arith.subf %42, %43 : vector<1x32xf32>
    %cst_18 = arith.constant 9.99999974E-6 : f32
    %45 = vector.broadcast %cst_18 : f32 to vector<1x32xf32>
    %46 = arith.addf %44, %45 : vector<1x32xf32>
    %47 = math.rsqrt %46 : vector<1x32xf32>
    %c5 = arith.constant 5 : index
    %c0_19 = arith.constant 0 : index
    %48 = vector.load %arg3[%c5, %c0_19] : memref<20x32xf32, #tpu.memory_space<vmem>>, vector<1x32xf32>
    %49 = arith.mulf %48, %47 : vector<1x32xf32>
    %c12 = arith.constant 12 : index
    %c0_20 = arith.constant 0 : index
    %50 = vector.load %arg3[%c12, %c0_20] : memref<20x32xf32, #tpu.memory_space<vmem>>, vector<1x32xf32>
    %51 = arith.mulf %40, %49 : vector<1x32xf32>
    %52 = arith.subf %50, %51 : vector<1x32xf32>
    %53 = vector.broadcast %49 : vector<1x32xf32> to vector<8x32xf32>
    %54 = arith.mulf %33, %53 : vector<8x32xf32>
    %55 = vector.broadcast %52 : vector<1x32xf32> to vector<8x32xf32>
    %56 = arith.addf %54, %55 : vector<8x32xf32>
    %cst_21 = arith.constant 0.000000e+00 : f32
    %57 = vector.broadcast %cst_21 : f32 to vector<8x32xf32>
    %58 = arith.maximumf %56, %57 : vector<8x32xf32>
    %59 = arith.truncf %58 : vector<8x32xf32> to vector<8x32xbf16>
    %c0_22 = arith.constant 0 : index
    %c0_23 = arith.constant 0 : index
    %60 = vector.load %arg5[%c0_22, %c0_23] : memref<8x64xbf16, #tpu.memory_space<vmem>>, vector<8x32xbf16>
    tpu.vector_store %arg5[%c0_22, %c0_23], %59 {strides = array<i32>} : memref<8x64xbf16, #tpu.memory_space<vmem>>, vector<8x32xbf16>,
    %c6 = arith.constant 6 : index
    %c0_24 = arith.constant 0 : index
    %61 = vector.load %arg3[%c6, %c0_24] : memref<20x32xf32, #tpu.memory_space<vmem>>, vector<1x32xf32>
    %62 = vector.broadcast %61 : vector<1x32xf32> to vector<8x32xf32>
    %63 = arith.mulf %26, %62 : vector<8x32xf32>
    %c13 = arith.constant 13 : index
    %c0_25 = arith.constant 0 : index
    %64 = vector.load %arg3[%c13, %c0_25] : memref<20x32xf32, #tpu.memory_space<vmem>>, vector<1x32xf32>
    %65 = vector.broadcast %64 : vector<1x32xf32> to vector<8x32xf32>
    %66 = arith.addf %63, %65 : vector<8x32xf32>
    %cst_26 = arith.constant 0.000000e+00 : f32
    %67 = vector.broadcast %cst_26 : f32 to vector<8x32xf32>
    %68 = arith.maximumf %66, %67 : vector<8x32xf32>
    %69 = arith.truncf %68 : vector<8x32xf32> to vector<8x32xbf16>
    %c0_27 = arith.constant 0 : index
    %c32 = arith.constant 32 : index
    %70 = vector.load %arg5[%c0_27, %c32] : memref<8x64xbf16, #tpu.memory_space<vmem>>, vector<8x32xbf16>
    tpu.vector_store %arg5[%c0_27, %c32], %69 {strides = array<i32>} : memref<8x64xbf16, #tpu.memory_space<vmem>>, vector<8x32xbf16>,
    %c0_28 = arith.constant 0 : index
    %c0_29 = arith.constant 0 : index
    %71 = vector.load %arg5[%c0_28, %c0_29] : memref<8x64xbf16, #tpu.memory_space<vmem>>, vector<8x64xbf16>
    %c32_30 = arith.constant 32 : index
    %c0_31 = arith.constant 0 : index
    %72 = vector.load %arg2[%c32_30, %c0_31] : memref<256x32xbf16, #tpu.memory_space<vmem>>, vector<64x32xbf16>
    %cst_32 = arith.constant dense<0.000000e+00> : vector<8x32xf32>
    %73 = tpu.matmul %71, %72, %cst_32 {dimension_numbers = #tpu.dot_dimension_numbers<[1], [0], [0], [1], [0, 0, 1, 1], [], []>} : vector<8x64xbf16>, vector<64x32xbf16>, vector<8x32xf32> -> vector<8x32xf32>
    %c1 = arith.constant 1 : index
    %c0_33 = arith.constant 0 : index
    %74 = vector.load %arg3[%c1, %c0_33] : memref<20x32xf32, #tpu.memory_space<vmem>>, vector<1x32xf32>
    %75 = vector.broadcast %74 : vector<1x32xf32> to vector<8x32xf32>
    %76 = arith.addf %73, %75 : vector<8x32xf32>
    %cst_34 = arith.constant dense<0.000000e+00> : vector<32xf32>
    %77 = vector.multi_reduction <add>, %76, %cst_34 [0] : vector<8x32xf32> to vector<32xf32>
    %78 = vector.shape_cast %77 : vector<32xf32> to vector<1x32xf32>
    %79 = arith.mulf %76, %76 : vector<8x32xf32>
    %cst_35 = arith.constant dense<0.000000e+00> : vector<32xf32>
    %80 = vector.multi_reduction <add>, %79, %cst_35 [0] : vector<8x32xf32> to vector<32xf32>
    %81 = vector.shape_cast %80 : vector<32xf32> to vector<1x32xf32>
    %cst_36 = arith.constant 1.250000e-01 : f32
    %82 = vector.broadcast %cst_36 : f32 to vector<1x32xf32>
    %83 = arith.mulf %78, %82 : vector<1x32xf32>
    %cst_37 = arith.constant 1.250000e-01 : f32
    %84 = vector.broadcast %cst_37 : f32 to vector<1x32xf32>
    %85 = arith.mulf %81, %84 : vector<1x32xf32>
    %86 = arith.mulf %83, %83 : vector<1x32xf32>
    %87 = arith.subf %85, %86 : vector<1x32xf32>
    %cst_38 = arith.constant 9.99999974E-6 : f32
    %88 = vector.broadcast %cst_38 : f32 to vector<1x32xf32>
    %89 = arith.addf %87, %88 : vector<1x32xf32>
    %90 = math.rsqrt %89 : vector<1x32xf32>
    %c7 = arith.constant 7 : index
    %c0_39 = arith.constant 0 : index
    %91 = vector.load %arg3[%c7, %c0_39] : memref<20x32xf32, #tpu.memory_space<vmem>>, vector<1x32xf32>
    %92 = arith.mulf %91, %90 : vector<1x32xf32>
    %c14 = arith.constant 14 : index
    %c0_40 = arith.constant 0 : index
    %93 = vector.load %arg3[%c14, %c0_40] : memref<20x32xf32, #tpu.memory_space<vmem>>, vector<1x32xf32>
    %94 = arith.mulf %83, %92 : vector<1x32xf32>
    %95 = arith.subf %93, %94 : vector<1x32xf32>
    %96 = vector.broadcast %92 : vector<1x32xf32> to vector<8x32xf32>
    %97 = arith.mulf %76, %96 : vector<8x32xf32>
    %98 = vector.broadcast %95 : vector<1x32xf32> to vector<8x32xf32>
    %99 = arith.addf %97, %98 : vector<8x32xf32>
    %cst_41 = arith.constant 0.000000e+00 : f32
    %100 = vector.broadcast %cst_41 : f32 to vector<8x32xf32>
    %101 = arith.maximumf %99, %100 : vector<8x32xf32>
    %102 = arith.truncf %101 : vector<8x32xf32> to vector<8x32xbf16>
    %c160 = arith.constant 160 : index
    %c0_42 = arith.constant 0 : index
    %103 = vector.load %arg2[%c160, %c0_42] : memref<256x32xbf16, #tpu.memory_space<vmem>>, vector<32x32xbf16>
    %cst_43 = arith.constant dense<0.000000e+00> : vector<8x32xf32>
    %104 = tpu.matmul %102, %103, %cst_43 {dimension_numbers = #tpu.dot_dimension_numbers<[1], [0], [0], [1], [0, 0, 1, 1], [], []>} : vector<8x32xbf16>, vector<32x32xbf16>, vector<8x32xf32> -> vector<8x32xf32>
    %c3 = arith.constant 3 : index
    %c0_44 = arith.constant 0 : index
    %105 = vector.load %arg3[%c3, %c0_44] : memref<20x32xf32, #tpu.memory_space<vmem>>, vector<1x32xf32>
    %106 = vector.broadcast %105 : vector<1x32xf32> to vector<8x32xf32>
    %107 = arith.addf %104, %106 : vector<8x32xf32>
    %cst_45 = arith.constant dense<0.000000e+00> : vector<32xf32>
    %108 = vector.multi_reduction <add>, %107, %cst_45 [0] : vector<8x32xf32> to vector<32xf32>
    %109 = vector.shape_cast %108 : vector<32xf32> to vector<1x32xf32>
    %110 = arith.mulf %107, %107 : vector<8x32xf32>
    %cst_46 = arith.constant dense<0.000000e+00> : vector<32xf32>
    %111 = vector.multi_reduction <add>, %110, %cst_46 [0] : vector<8x32xf32> to vector<32xf32>
    %112 = vector.shape_cast %111 : vector<32xf32> to vector<1x32xf32>
    %cst_47 = arith.constant 1.250000e-01 : f32
    %113 = vector.broadcast %cst_47 : f32 to vector<1x32xf32>
    %114 = arith.mulf %109, %113 : vector<1x32xf32>
    %cst_48 = arith.constant 1.250000e-01 : f32
    %115 = vector.broadcast %cst_48 : f32 to vector<1x32xf32>
    %116 = arith.mulf %112, %115 : vector<1x32xf32>
    %117 = arith.mulf %114, %114 : vector<1x32xf32>
    %118 = arith.subf %116, %117 : vector<1x32xf32>
    %cst_49 = arith.constant 9.99999974E-6 : f32
    %119 = vector.broadcast %cst_49 : f32 to vector<1x32xf32>
    %120 = arith.addf %118, %119 : vector<1x32xf32>
    %121 = math.rsqrt %120 : vector<1x32xf32>
    %c8 = arith.constant 8 : index
    %c0_50 = arith.constant 0 : index
    %122 = vector.load %arg3[%c8, %c0_50] : memref<20x32xf32, #tpu.memory_space<vmem>>, vector<1x32xf32>
    %123 = arith.mulf %122, %121 : vector<1x32xf32>
    %c15 = arith.constant 15 : index
    %c0_51 = arith.constant 0 : index
    %124 = vector.load %arg3[%c15, %c0_51] : memref<20x32xf32, #tpu.memory_space<vmem>>, vector<1x32xf32>
    %125 = arith.mulf %114, %123 : vector<1x32xf32>
    %126 = arith.subf %124, %125 : vector<1x32xf32>
    %127 = vector.broadcast %123 : vector<1x32xf32> to vector<8x32xf32>
    %128 = arith.mulf %107, %127 : vector<8x32xf32>
    %129 = vector.broadcast %126 : vector<1x32xf32> to vector<8x32xf32>
    %130 = arith.addf %128, %129 : vector<8x32xf32>
    %cst_52 = arith.constant 0.000000e+00 : f32
    %131 = vector.broadcast %cst_52 : f32 to vector<8x32xf32>
    %132 = arith.maximumf %130, %131 : vector<8x32xf32>
    %133 = arith.truncf %132 : vector<8x32xf32> to vector<8x32xbf16>
    %c0_53 = arith.constant 0 : index
    %c0_54 = arith.constant 0 : index
    %134 = vector.load %arg5[%c0_53, %c0_54] : memref<8x64xbf16, #tpu.memory_space<vmem>>, vector<8x32xbf16>
    tpu.vector_store %arg5[%c0_53, %c0_54], %133 {strides = array<i32>} : memref<8x64xbf16, #tpu.memory_space<vmem>>, vector<8x32xbf16>,
    %c9 = arith.constant 9 : index
    %c0_55 = arith.constant 0 : index
    %135 = vector.load %arg3[%c9, %c0_55] : memref<20x32xf32, #tpu.memory_space<vmem>>, vector<1x32xf32>
    %136 = vector.broadcast %135 : vector<1x32xf32> to vector<8x32xf32>
    %137 = arith.mulf %26, %136 : vector<8x32xf32>
    %c16_56 = arith.constant 16 : index
    %c0_57 = arith.constant 0 : index
    %138 = vector.load %arg3[%c16_56, %c0_57] : memref<20x32xf32, #tpu.memory_space<vmem>>, vector<1x32xf32>
    %139 = vector.broadcast %138 : vector<1x32xf32> to vector<8x32xf32>
    %140 = arith.addf %137, %139 : vector<8x32xf32>
    %cst_58 = arith.constant 0.000000e+00 : f32
    %141 = vector.broadcast %cst_58 : f32 to vector<8x32xf32>
    %142 = arith.maximumf %140, %141 : vector<8x32xf32>
    %143 = arith.truncf %142 : vector<8x32xf32> to vector<8x32xbf16>
    %c0_59 = arith.constant 0 : index
    %c32_60 = arith.constant 32 : index
    %144 = vector.load %arg5[%c0_59, %c32_60] : memref<8x64xbf16, #tpu.memory_space<vmem>>, vector<8x32xbf16>
    tpu.vector_store %arg5[%c0_59, %c32_60], %143 {strides = array<i32>} : memref<8x64xbf16, #tpu.memory_space<vmem>>, vector<8x32xbf16>,
    %c0_61 = arith.constant 0 : index
    %c0_62 = arith.constant 0 : index
    %145 = vector.load %arg5[%c0_61, %c0_62] : memref<8x64xbf16, #tpu.memory_space<vmem>>, vector<8x64xbf16>
    %c96 = arith.constant 96 : index
    %c0_63 = arith.constant 0 : index
    %146 = vector.load %arg2[%c96, %c0_63] : memref<256x32xbf16, #tpu.memory_space<vmem>>, vector<64x32xbf16>
    %cst_64 = arith.constant dense<0.000000e+00> : vector<8x32xf32>
    %147 = tpu.matmul %145, %146, %cst_64 {dimension_numbers = #tpu.dot_dimension_numbers<[1], [0], [0], [1], [0, 0, 1, 1], [], []>} : vector<8x64xbf16>, vector<64x32xbf16>, vector<8x32xf32> -> vector<8x32xf32>
    %c2 = arith.constant 2 : index
    %c0_65 = arith.constant 0 : index
    %148 = vector.load %arg3[%c2, %c0_65] : memref<20x32xf32, #tpu.memory_space<vmem>>, vector<1x32xf32>
    %149 = vector.broadcast %148 : vector<1x32xf32> to vector<8x32xf32>
    %150 = arith.addf %147, %149 : vector<8x32xf32>
    %cst_66 = arith.constant dense<0.000000e+00> : vector<32xf32>
    %151 = vector.multi_reduction <add>, %150, %cst_66 [0] : vector<8x32xf32> to vector<32xf32>
    %152 = vector.shape_cast %151 : vector<32xf32> to vector<1x32xf32>
    %153 = arith.mulf %150, %150 : vector<8x32xf32>
    %cst_67 = arith.constant dense<0.000000e+00> : vector<32xf32>
    %154 = vector.multi_reduction <add>, %153, %cst_67 [0] : vector<8x32xf32> to vector<32xf32>
    %155 = vector.shape_cast %154 : vector<32xf32> to vector<1x32xf32>
    %cst_68 = arith.constant 1.250000e-01 : f32
    %156 = vector.broadcast %cst_68 : f32 to vector<1x32xf32>
    %157 = arith.mulf %152, %156 : vector<1x32xf32>
    %cst_69 = arith.constant 1.250000e-01 : f32
    %158 = vector.broadcast %cst_69 : f32 to vector<1x32xf32>
    %159 = arith.mulf %155, %158 : vector<1x32xf32>
    %160 = arith.mulf %157, %157 : vector<1x32xf32>
    %161 = arith.subf %159, %160 : vector<1x32xf32>
    %cst_70 = arith.constant 9.99999974E-6 : f32
    %162 = vector.broadcast %cst_70 : f32 to vector<1x32xf32>
    %163 = arith.addf %161, %162 : vector<1x32xf32>
    %164 = math.rsqrt %163 : vector<1x32xf32>
    %c10 = arith.constant 10 : index
    %c0_71 = arith.constant 0 : index
    %165 = vector.load %arg3[%c10, %c0_71] : memref<20x32xf32, #tpu.memory_space<vmem>>, vector<1x32xf32>
    %166 = arith.mulf %165, %164 : vector<1x32xf32>
    %c17 = arith.constant 17 : index
    %c0_72 = arith.constant 0 : index
    %167 = vector.load %arg3[%c17, %c0_72] : memref<20x32xf32, #tpu.memory_space<vmem>>, vector<1x32xf32>
    %168 = arith.mulf %157, %166 : vector<1x32xf32>
    %169 = arith.subf %167, %168 : vector<1x32xf32>
    %170 = vector.broadcast %166 : vector<1x32xf32> to vector<8x32xf32>
    %171 = arith.mulf %150, %170 : vector<8x32xf32>
    %172 = vector.broadcast %169 : vector<1x32xf32> to vector<8x32xf32>
    %173 = arith.addf %171, %172 : vector<8x32xf32>
    %cst_73 = arith.constant 0.000000e+00 : f32
    %174 = vector.broadcast %cst_73 : f32 to vector<8x32xf32>
    %175 = arith.maximumf %173, %174 : vector<8x32xf32>
    %176 = arith.truncf %175 : vector<8x32xf32> to vector<8x32xbf16>
    %c192 = arith.constant 192 : index
    %c0_74 = arith.constant 0 : index
    %177 = vector.load %arg2[%c192, %c0_74] : memref<256x32xbf16, #tpu.memory_space<vmem>>, vector<32x32xbf16>
    %cst_75 = arith.constant dense<0.000000e+00> : vector<8x32xf32>
    %178 = tpu.matmul %176, %177, %cst_75 {dimension_numbers = #tpu.dot_dimension_numbers<[1], [0], [0], [1], [0, 0, 1, 1], [], []>} : vector<8x32xbf16>, vector<32x32xbf16>, vector<8x32xf32> -> vector<8x32xf32>
    %c4 = arith.constant 4 : index
    %c0_76 = arith.constant 0 : index
    %179 = vector.load %arg3[%c4, %c0_76] : memref<20x32xf32, #tpu.memory_space<vmem>>, vector<1x32xf32>
    %180 = vector.broadcast %179 : vector<1x32xf32> to vector<8x32xf32>
    %181 = arith.addf %178, %180 : vector<8x32xf32>
    %cst_77 = arith.constant dense<0.000000e+00> : vector<32xf32>
    %182 = vector.multi_reduction <add>, %181, %cst_77 [0] : vector<8x32xf32> to vector<32xf32>
    %183 = vector.shape_cast %182 : vector<32xf32> to vector<1x32xf32>
    %184 = arith.mulf %181, %181 : vector<8x32xf32>
    %cst_78 = arith.constant dense<0.000000e+00> : vector<32xf32>
    %185 = vector.multi_reduction <add>, %184, %cst_78 [0] : vector<8x32xf32> to vector<32xf32>
    %186 = vector.shape_cast %185 : vector<32xf32> to vector<1x32xf32>
    %cst_79 = arith.constant 1.250000e-01 : f32
    %187 = vector.broadcast %cst_79 : f32 to vector<1x32xf32>
    %188 = arith.mulf %183, %187 : vector<1x32xf32>
    %cst_80 = arith.constant 1.250000e-01 : f32
    %189 = vector.broadcast %cst_80 : f32 to vector<1x32xf32>
    %190 = arith.mulf %186, %189 : vector<1x32xf32>
    %191 = arith.mulf %188, %188 : vector<1x32xf32>
    %192 = arith.subf %190, %191 : vector<1x32xf32>
    %cst_81 = arith.constant 9.99999974E-6 : f32
    %193 = vector.broadcast %cst_81 : f32 to vector<1x32xf32>
    %194 = arith.addf %192, %193 : vector<1x32xf32>
    %195 = math.rsqrt %194 : vector<1x32xf32>
    %c11 = arith.constant 11 : index
    %c0_82 = arith.constant 0 : index
    %196 = vector.load %arg3[%c11, %c0_82] : memref<20x32xf32, #tpu.memory_space<vmem>>, vector<1x32xf32>
    %197 = arith.mulf %196, %195 : vector<1x32xf32>
    %c18 = arith.constant 18 : index
    %c0_83 = arith.constant 0 : index
    %198 = vector.load %arg3[%c18, %c0_83] : memref<20x32xf32, #tpu.memory_space<vmem>>, vector<1x32xf32>
    %199 = arith.mulf %188, %197 : vector<1x32xf32>
    %200 = arith.subf %198, %199 : vector<1x32xf32>
    %201 = vector.broadcast %197 : vector<1x32xf32> to vector<8x32xf32>
    %202 = arith.mulf %181, %201 : vector<8x32xf32>
    %203 = vector.broadcast %200 : vector<1x32xf32> to vector<8x32xf32>
    %204 = arith.addf %202, %203 : vector<8x32xf32>
    %cst_84 = arith.constant 0.000000e+00 : f32
    %205 = vector.broadcast %cst_84 : f32 to vector<8x32xf32>
    %206 = arith.maximumf %204, %205 : vector<8x32xf32>
    %207 = arith.truncf %206 : vector<8x32xf32> to vector<8x32xbf16>
    %c224 = arith.constant 224 : index
    %c0_85 = arith.constant 0 : index
    %208 = vector.load %arg2[%c224, %c0_85] : memref<256x32xbf16, #tpu.memory_space<vmem>>, vector<32x16xbf16>
    %cst_86 = arith.constant dense<0.000000e+00> : vector<8x16xf32>
    %209 = tpu.matmul %207, %208, %cst_86 {dimension_numbers = #tpu.dot_dimension_numbers<[1], [0], [0], [1], [0, 0, 1, 1], [], []>} : vector<8x32xbf16>, vector<32x16xbf16>, vector<8x16xf32> -> vector<8x16xf32>
    %c19 = arith.constant 19 : index
    %c0_87 = arith.constant 0 : index
    %210 = vector.load %arg3[%c19, %c0_87] : memref<20x32xf32, #tpu.memory_space<vmem>>, vector<1x16xf32>
    %211 = vector.broadcast %210 : vector<1x16xf32> to vector<8x16xf32>
    %212 = arith.addf %209, %211 : vector<8x16xf32>
    %c0_88 = arith.constant 0 : index
    %c0_89 = arith.constant 0 : index
    %213 = vector.load %arg4[%c0_88, %c0_89] : memref<8x16xf32, #tpu.memory_space<vmem>>, vector<8x16xf32>
    tpu.vector_store %arg4[%c0_88, %c0_89], %212 {strides = array<i32>} : memref<8x16xf32, #tpu.memory_space<vmem>>, vector<8x16xf32>,
    return
  }
}

</mosaic_0001>

<bundles_post_ra>
// kernel: mlp_score_forward.1
= control target key start
LH: loop header
LB: loop body
LE: loop exit
PB: predicated region body
PF: predicated region fallthrough
CT: control target
= control target key end

     0   :  { %v948_v1 = vmov 0   ;;  %v949_v2 = vmov 0.0   ;;  %vm950_vm0 = vmmov 0   ;;  %vm37_vm1 = vcmask 130048   ;;  %s1171_s0 = inlined_call_operand.vmem [shape: s32[8,1], index: 0, kind: input, shape index: {}]   ;;  %s1172_s1 = inlined_call_operand.vmem [shape: f32[8,16], index: 1, kind: input, shape index: {}]   ;;  %s1173_s2 = inlined_call_operand.vmem [shape: bf16[256,32], index: 2, kind: input, shape index: {}]   ;;  %s1174_s3 = inlined_call_operand.vmem [shape: f32[20,32], index: 3, kind: input, shape index: {}]   ;;  %s1175_s4 = inlined_call_operand.hbm [shape: f32[8,16], index: 4, kind: output, shape index: {}]  }
   0x1   :  { %v19_v0 = vld [vmem:[%s1171_s0] sm:$0xff]  ;;  %895 = vset.pattern.permute.xlu0 %v948_v1  ;;  %830 = vmatprep.subr.bf16.mxu0 %v949_v2  ;;  %v897_v4 = vld [vmem:[%s1173_s2 + $0x8] sm:$0xff]  }
   0x2   :  { %v896_v3 = vld [vmem:[%s1173_s2] sm:$0xff]   ;;  %23 = vperm.xlu0 %895, %v19_v0   ;;  %836 = vmatprep.subr.bf16.mxu1 %v949_v2 }
   0x3   :  { %831 = vmatpush3.bf16.msra.mxu0 %v896_v3  ;;  %832 = vmatprep.mubr.msk.bf16.mxu0 %vm950_vm0, %v949_v2  ;;  %v105_v5 = vld [vmem:[%s1172_s1] sm:$0xff] }
   0x4   :  { %842 = vmatprep.subr.bf16.mxu0 %v949_v2  ;;  %838 = vmatprep.mubr.msk.bf16.mxu1 %vm950_vm0, %v949_v2  ;;  %v106_v6 = vpack.c.bf16 %v105_v5, %v105_v5 }
   0x5   :  { %837 = vmatpush3.bf16.msra.mxu1 %v897_v4 }
   0x6   :  { %854 = vmatprep.subr.bf16.mxu1 %v949_v2 }
   0x8   :  { %839 = vmatmul.mubr.msk.bf16.vlgmr.msra.gmra.mrb[0].mxu1 %vm37_vm1, %v106_v6 }
   0x9   :  { %858 = vmatprep.mubr.msk.bf16.mxu1 %vm950_vm0, %v949_v2 }
   0xa   :  { %9 = vsyncpa [#allocation4], 0  ;;  %v20_v7 = vlaneseq  ;;  %v772_v12 = vld [vmem:[%s1174_s3] ss:$0 sm:$0xff]  ;;  %v898_v14 = vld [vmem:[%s1173_s2 + $0x10] sm:$0xff]   ;;  %vm81_vm3 = vcmask 261120  }
   0xb   :  { %v899_v18 = vld [vmem:[%s1173_s2 + $0x18] sm:$0xff]   ;;  %v184_v42 = vld [vmem:[%s1174_s3 + $0x5] sm:$0x1]  ;;  %v186_v47 = vld [vmem:[%s1174_s3 + $0xc] sm:$0x1]  ;;  %vm201_vm4 = vcmask 257024  }
   0xc   :  { %v21_v8 = vand.u32 127, %v20_v7  ;;  %v190_v40 = vshrl.u32 %v20_v7, 7  ;;  %s951_s17 = smov 32   ;;  %vm223_vm5 = vcmask 519424   ;;  %vm263_vm6 = vcmask 523264   ;;  %s952_s7 = smov [#allocation3]  }
   0xd   :  { %s761_s8 = sshll.u32 %s952_s7, 4  ;;  %s762_s8 = int_to_ptr.vmem [resolvable:$true] %s761_s8 }
   0xe   :  { %v1021_v43 = vsub.s32 0, %v190_v40  ;;  %s924_s9 = scalar_lea.vmem %s762_s8, 128  ;;  %p929_p1 = scmp.lt.s32.totalorder %s762_s8, %s762_s8 }
   0xf   :  { %p925_p0 = scmp.ne.s32.totalorder %s762_s8, %s924_s9  ;;  %p930_p2 = scmp.lt.s32.totalorder %s924_s9, %s924_s9 }
  0x11   :  { %p931_p3 = por %p930_p2, %p929_p1 }
  0x13   :  { %p932_p4 = pnand %p931_p3, %p925_p0 }
  0x81   :  { %v24_v9 = vpop.permute.xlu0 %23 }
  0x82   :  { %vm25_vm2 = vcmp.eq.s32.totalorder %v21_v8, %v24_v9 }
  0x83   :  { %v769_v10 = vsel %vm25_vm2, 1.0, %v949_v2 }
  0x84   :  { %v28_v11 = vpack.c.bf16 %v769_v10, %v769_v10 }
  0x86   :  { %833 = vmatmul.mubr.msk.bf16.vlgmr.msra.gmra.mrb[0].mxu0 %vm37_vm1, %v28_v11 }
  0x87   :  { %850 = vmatprep.mubr.msk.bf16.mxu0 %vm950_vm0, %v949_v2  ;;  %843 = vmatpush3.bf16.msra.mxu0 %v898_v14 }
  0x88   :  { %844 = vmatprep.subr.bf16.mxu0 %v949_v2 }
  0x8b   :  { %845 = vmatpush3.bf16.msra.mxu0 %v899_v18 }
  0x8c   :  { %846 = vmatprep.subr.bf16.mxu0 %v949_v2 }
  0xdb   :  { %v157_v13 = vpop.f32.mrb[0].mxu1 }
  0xdc   :  { %v158_v15 = vadd.f32 %v772_v12, %v157_v13  ;;  %v840_v16 = vpop.f32.mrb[1].mxu1 }
  0xdd   :  { %v160_v17 = vpop.f32.mrb[2].mxu1 }
  0xde   :  { %v163_v19 = vsel %vm81_vm3, %v158_v15, 0.0  ;;  %v170_v20 = vmul.f32 %v158_v15, %v158_v15  ;;  %v841_v21 = vpop.f32.mrb[3].mxu1  ;;  %v901_v17 = vld [vmem:[%s1173_s2 + $0x28] sm:$0xff]  }
  0xdf   :  { %v164_v22 = vrot.slane %v163_v19, 4 }
  0xe0   :  { %v171_v23 = vsel %vm81_vm3, %v170_v20, 0.0  ;;  %v775_v20 = vld [vmem:[%s1174_s3 + $0x6] ss:$0 sm:$0xff] }
  0xe1   :  { %v165_v24 = vadd.f32 %v164_v22, %v163_v19  ;;  %v172_v25 = vrot.slane %v171_v23, 4  ;;  %v788_v19 = vld [vmem:[%s1174_s3 + $0x9] ss:$0 sm:$0xff]  ;;  %v789_v22 = vld [vmem:[%s1174_s3 + $0x10] ss:$0 sm:$0xff] }
  0xe3   :  { %v166_v26 = vrot.slane %v165_v24, 2  ;;  %v173_v27 = vadd.f32 %v172_v25, %v171_v23  ;;  %v776_v23 = vld [vmem:[%s1174_s3 + $0xd] ss:$0 sm:$0xff] }
  0xe5   :  { %v167_v28 = vadd.f32 %v166_v26, %v165_v24  ;;  %v174_v29 = vrot.slane %v173_v27, 2 }
  0xe7   :  { %v168_v30 = vrot.slane %v167_v28, 1  ;;  %v175_v31 = vadd.f32 %v174_v29, %v173_v27 }
  0xe9   :  { %v169_v32 = vadd.f32 %v168_v30, %v167_v28  ;;  %v176_v33 = vrot.slane %v175_v31, 1 }
  0xeb   :  { %v177_v34 = vadd.f32 %v176_v33, %v175_v31  ;;  %v178_v35 = vmul.f32 0.125, %v169_v32 }
  0xed   :  { %v179_v36 = vmul.f32 0.125, %v177_v34  ;;  %v180_v37 = vmul.f32 %v178_v35, %v178_v35  ;;  %v902_v34 = vld [vmem:[%s1173_s2 + $0x50] sm:$0xff]  }
  0xee   :  { %855 = vmatpush3.bf16.msra.mxu1 %v902_v34 }
  0xef   :  { %v181_v38 = vsub.f32 %v179_v36, %v180_v37  ;;  %856 = vmatprep.subr.bf16.mxu1 %v949_v2  ;;  %v778_v36 = vld [vmem:[%s1174_s3 + $0x1] ss:$0 sm:$0xff] }
  0xf1   :  { %v182_v39 = vadd.f32 1e-05, %v181_v38 }
  0xf3   :  { %912 = vrsqrt.f32 %v182_v39 }
  0xfd   :  { %v913_v41 = vpop.eup %912 }
  0xfe   :  { %v185_v44 = vmul.f32 %v913_v41, %v184_v42 }
 0x100   :  { %v187_v45 = vmul.f32 %v185_v44, %v178_v35  ;;  %v192_v46 = vrot.slane %v185_v44, %v1021_v43  ;;  %v903_v35 = vld [vmem:[%s1173_s2 + $0x58] sm:$0xff]  }
 0x101   :  { %857 = vmatpush3.bf16.msra.mxu1 %v903_v35 }
 0x102   :  { %v193_v48 = vmul.f32 %v192_v46, %v158_v15  ;;  %v188_v49 = vsub.f32 %v186_v47, %v187_v45  ;;  %v900_v15 = vld [vmem:[%s1173_s2 + $0x20] sm:$0xff]   ;;  %862 = vmatprep.subr.bf16.mxu1 %v949_v2 }
 0x103   :  { %847 = vmatpush3.bf16.msra.mxu0 %v900_v15  ;;  %v907_v15 = vld [vmem:[%s1173_s2 + $0x48] sm:$0xff]  }
 0x104   :  { %v197_v50 = vrot.slane %v188_v49, %v1021_v43  ;;  %848 = vmatprep.subr.bf16.mxu0 %v949_v2 }
 0x106   :  { %v198_v51 = vadd.f32 %v197_v50, %v193_v48 }
 0x107   :  { %849 = vmatpush3.bf16.msra.mxu0 %v901_v17 }
 0x108   :  { %v199_v52 = vmax.f32 %v198_v51, 0.0  ;;  %874 = vmatprep.subr.bf16.mxu0 %v949_v2 }
 0x10a   :  { %v200_v53 = vpack.c.bf16 %v199_v52, %v199_v52 }
 0x10c   :  { %202 = vst.msk [vmem:[#allocation2] sm:$0xf] %vm201_vm4, %v200_v53 }
 0x159   :  { %v75_v54 = vpop.f32.mrb[0].mxu0 }
 0x15a   :  { %v82_v55 = vsel %vm81_vm3, %v75_v54, 0.0  ;;  %v89_v56 = vmul.f32 %v75_v54, %v75_v54  ;;  %v834_v57 = vpop.f32.mrb[1].mxu0 }
 0x15b   :  { %v83_v58 = vrot.slane %v82_v55, 4  ;;  %v78_v59 = vpop.f32.mrb[2].mxu0 }
 0x15c   :  { %v90_v60 = vsel %vm81_vm3, %v89_v56, 0.0  ;;  %v835_v61 = vpop.f32.mrb[3].mxu0 }
 0x15d   :  { %v84_v62 = vadd.f32 %v83_v58, %v82_v55  ;;  %v91_v63 = vrot.slane %v90_v60, 4 }
 0x15f   :  { %v85_v0 = vrot.slane %v84_v62, 2  ;;  %v92_v1 = vadd.f32 %v91_v63, %v90_v60  ;;  %v328_v63 = vld [vmem:[%s1174_s3 + $0x7] sm:$0x1] }
 0x161   :  { %v86_v3 = vadd.f32 %v85_v0, %v84_v62  ;;  %v93_v4 = vrot.slane %v92_v1, 2 }
 0x163   :  { %v87_v5 = vrot.slane %v86_v3, 1  ;;  %v94_v6 = vadd.f32 %v93_v4, %v92_v1 }
 0x165   :  { %v88_v7 = vadd.f32 %v87_v5, %v86_v3  ;;  %v95_v8 = vrot.slane %v94_v6, 1  ;;  %v330_v3 = vld [vmem:[%s1174_s3 + $0xe] sm:$0x1] }
 0x167   :  { %v96_v9 = vadd.f32 %v95_v8, %v94_v6  ;;  %v97_v10 = vmul.f32 0.125, %v88_v7 }
 0x169   :  { %v98_v11 = vmul.f32 0.125, %v96_v9  ;;  %v99_v12 = vmul.f32 %v97_v10, %v97_v10  ;;  %v103_v16 = vsub.f32 %v75_v54, %v97_v10 }
 0x16b   :  { %v100_v13 = vsub.f32 %v98_v11, %v99_v12  ;;  %v904_v12 = vld [vmem:[%s1173_s2 + $0x30] sm:$0xff]  }
 0x16d   :  { %v101_v14 = vadd.f32 1e-05, %v100_v13  ;;  %v905_v13 = vld [vmem:[%s1173_s2 + $0x38] sm:$0xff]  }
 0x16f   :  { %914 = vrsqrt.f32 %v101_v14  ;;  %v906_v14 = vld [vmem:[%s1173_s2 + $0x40] sm:$0xff]  }
 0x179   :  { %v915_v18 = vpop.eup %914 }
 0x17a   :  { %v104_v21 = vmul.f32 %v915_v18, %v103_v16  ;;  %v784_v16 = vld [vmem:[%s1174_s3 + $0x3] ss:$0 sm:$0xff] }
 0x17c   :  { %v453_v24 = vmul.f32 %v788_v19, %v104_v21  ;;  %v208_v25 = vmul.f32 %v775_v20, %v104_v21 }
 0x17e   :  { %v459_v26 = vadd.f32 %v789_v22, %v453_v24  ;;  %v214_v27 = vadd.f32 %v776_v23, %v208_v25 }
 0x180   :  { %v460_v28 = vmax.f32 %v459_v26, 0.0  ;;  %v215_v29 = vmax.f32 %v214_v27, 0.0 }
 0x182   :  { %v806_v30 = vpack.c.bf16 %v460_v28, %v460_v28  ;;  %v805_v31 = vpack.c.bf16 %v215_v29, %v215_v29 }
 0x184   :  { %465 = vrot.lane.b32.xlu1 %v806_v30, %s951_s17  ;;  %220 = vrot.lane.b32.xlu0 %v805_v31, %s951_s17 }
 0x1f6   :  { %v221_v32 = vpop.permute.xlu0 %220 }
 0x1f7   :  { %224 = vst.msk [vmem:[#allocation2] sm:$0xf] %vm223_vm5, %v221_v32 }
 0x1fe   :  { %v225_v33 = vld [vmem:[#allocation2] sm:$0xf] }
 0x1ff   :  { %851 = vmatmul.mubr.msk.bf16.vlgmr.msra.gmra.mrb[4].mxu0 %vm263_vm6, %v225_v33 }
 0x200   :  { %878 = vmatprep.mubr.msk.bf16.mxu0 %vm950_vm0, %v949_v2 }
 0x2d2   :  { %v301_v37 = vpop.f32.mrb[4].mxu0 }
 0x2d3   :  { %v302_v38 = vadd.f32 %v778_v36, %v301_v37  ;;  %v852_v39 = vpop.f32.mrb[5].mxu0 }
 0x2d4   :  { %v304_v40 = vpop.f32.mrb[6].mxu0 }
 0x2d5   :  { %v307_v41 = vsel %vm81_vm3, %v302_v38, 0.0  ;;  %v314_v42 = vmul.f32 %v302_v38, %v302_v38  ;;  %v853_v44 = vpop.f32.mrb[7].mxu0 }
 0x2d6   :  { %v308_v45 = vrot.slane %v307_v41, 4 }
 0x2d7   :  { %v315_v46 = vsel %vm81_vm3, %v314_v42, 0.0  ;;  %v430_v42 = vld [vmem:[%s1174_s3 + $0x8] sm:$0x1] }
 0x2d8   :  { %v309_v47 = vadd.f32 %v308_v45, %v307_v41  ;;  %v316_v48 = vrot.slane %v315_v46, 4 }
 0x2da   :  { %v310_v49 = vrot.slane %v309_v47, 2  ;;  %v317_v50 = vadd.f32 %v316_v48, %v315_v46  ;;  %v432_v46 = vld [vmem:[%s1174_s3 + $0xf] sm:$0x1] }
 0x2dc   :  { %v311_v51 = vadd.f32 %v310_v49, %v309_v47  ;;  %v318_v52 = vrot.slane %v317_v50, 2 }
 0x2de   :  { %v312_v53 = vrot.slane %v311_v51, 1  ;;  %v319_v54 = vadd.f32 %v318_v52, %v317_v50 }
 0x2e0   :  { %v313_v55 = vadd.f32 %v312_v53, %v311_v51  ;;  %v320_v56 = vrot.slane %v319_v54, 1 }
 0x2e2   :  { %v321_v57 = vadd.f32 %v320_v56, %v319_v54  ;;  %v322_v58 = vmul.f32 0.125, %v313_v55  ;;  %v466_v55 = vpop.permute.xlu1 %465 }
 0x2e4   :  { %v323_v59 = vmul.f32 0.125, %v321_v57  ;;  %v324_v60 = vmul.f32 %v322_v58, %v322_v58  ;;  %v908_v57 = vld [vmem:[%s1173_s2 + $0x60] sm:$0xff]  }
 0x2e5   :  { %875 = vmatpush3.bf16.msra.mxu0 %v908_v57 }
 0x2e6   :  { %v325_v61 = vsub.f32 %v323_v59, %v324_v60  ;;  %876 = vmatprep.subr.bf16.mxu0 %v949_v2  ;;  %v791_v59 = vld [vmem:[%s1174_s3 + $0x2] ss:$0 sm:$0xff] }
 0x2e8   :  { %v326_v62 = vadd.f32 1e-05, %v325_v61 }
 0x2ea   :  { %916 = vrsqrt.f32 %v326_v62 }
 0x2f4   :  { %v917_v0 = vpop.eup %916 }
 0x2f5   :  { %v329_v1 = vmul.f32 %v917_v0, %v328_v63 }
 0x2f7   :  { %v331_v4 = vmul.f32 %v329_v1, %v322_v58  ;;  %v336_v5 = vrot.slane %v329_v1, %v1021_v43  ;;  %v909_v58 = vld [vmem:[%s1173_s2 + $0x68] sm:$0xff]  }
 0x2f8   :  { %877 = vmatpush3.bf16.msra.mxu0 %v909_v58 }
 0x2f9   :  { %v332_v6 = vsub.f32 %v330_v3, %v331_v4  ;;  %v337_v7 = vmul.f32 %v336_v5, %v302_v38  ;;  %882 = vmatprep.subr.bf16.mxu0 %v949_v2 }
 0x2fb   :  { %v341_v8 = vrot.slane %v332_v6, %v1021_v43 }
 0x2fd   :  { %v342_v9 = vadd.f32 %v341_v8, %v337_v7 }
 0x2ff   :  { %v343_v10 = vmax.f32 %v342_v9, 0.0 }
 0x301   :  { %v344_v11 = vpack.c.bf16 %v343_v10, %v343_v10 }
 0x303   :  { %859 = vmatmul.mubr.msk.bf16.vlgmr.msra.gmra.mrb[4].mxu1 %vm81_vm3, %v344_v11 }
 0x304   :  { %870 = vmatprep.mubr.msk.bf16.mxu1 %vm950_vm0, %v949_v2  ;;  %863 = vmatpush3.bf16.msra.mxu1 %v904_v12 }
 0x305   :  { %864 = vmatprep.subr.bf16.mxu1 %v949_v2 }
 0x308   :  { %865 = vmatpush3.bf16.msra.mxu1 %v905_v13 }
 0x309   :  { %866 = vmatprep.subr.bf16.mxu1 %v949_v2 }
 0x30c   :  { %867 = vmatpush3.bf16.msra.mxu1 %v906_v14 }
 0x30d   :  { %868 = vmatprep.subr.bf16.mxu1 %v949_v2 }
 0x310   :  { %869 = vmatpush3.bf16.msra.mxu1 %v907_v15 }
 0x3d6   :  { %v403_v17 = vpop.f32.mrb[4].mxu1 }
 0x3d7   :  { %v404_v18 = vadd.f32 %v784_v16, %v403_v17  ;;  %v860_v19 = vpop.f32.mrb[5].mxu1 }
 0x3d8   :  { %v406_v20 = vpop.f32.mrb[6].mxu1 }
 0x3d9   :  { %v409_v21 = vsel %vm81_vm3, %v404_v18, 0.0  ;;  %v416_v22 = vmul.f32 %v404_v18, %v404_v18  ;;  %v861_v23 = vpop.f32.mrb[7].mxu1 }
 0x3da   :  { %v410_v24 = vrot.slane %v409_v21, 4 }
 0x3db   :  { %v417_v25 = vsel %vm81_vm3, %v416_v22, 0.0  ;;  %v571_v22 = vld [vmem:[%s1174_s3 + $0xa] sm:$0x1] }
 0x3dc   :  { %v411_v26 = vadd.f32 %v410_v24, %v409_v21  ;;  %v418_v27 = vrot.slane %v417_v25, 4 }
 0x3de   :  { %v412_v28 = vrot.slane %v411_v26, 2  ;;  %v419_v29 = vadd.f32 %v418_v27, %v417_v25  ;;  %v573_v25 = vld [vmem:[%s1174_s3 + $0x11] sm:$0x1] }
 0x3e0   :  { %v413_v30 = vadd.f32 %v412_v28, %v411_v26  ;;  %v420_v31 = vrot.slane %v419_v29, 2 }
 0x3e2   :  { %v414_v32 = vrot.slane %v413_v30, 1  ;;  %v421_v33 = vadd.f32 %v420_v31, %v419_v29 }
 0x3e4   :  { %v415_v34 = vadd.f32 %v414_v32, %v413_v30  ;;  %v422_v35 = vrot.slane %v421_v33, 1 }
 0x3e6   :  { %v423_v36 = vadd.f32 %v422_v35, %v421_v33  ;;  %v424_v37 = vmul.f32 0.125, %v415_v34  ;;  %v910_v34 = vld [vmem:[%s1173_s2 + $0x70] sm:$0xff]   ;;  %v911_v35 = vld [vmem:[%s1173_s2 + $0x78] sm:$0xff]  }
 0x3e8   :  { %v425_v38 = vmul.f32 0.125, %v423_v36  ;;  %v426_v39 = vmul.f32 %v424_v37, %v424_v37  ;;  %v797_v36 = vld [vmem:[%s1174_s3 + $0x4] ss:$0 sm:$0xff] }
 0x3ea   :  { %v427_v40 = vsub.f32 %v425_v38, %v426_v39 }
 0x3ec   :  { %v428_v41 = vadd.f32 1e-05, %v427_v40 }
 0x3ee   :  { %918 = vrsqrt.f32 %v428_v41 }
 0x3f8   :  { %v919_v44 = vpop.eup %918 }
 0x3f9   :  { %v431_v45 = vmul.f32 %v919_v44, %v430_v42 }
 0x3fb   :  { %v433_v47 = vmul.f32 %v431_v45, %v424_v37  ;;  %v438_v48 = vrot.slane %v431_v45, %v1021_v43 }
 0x3fd   :  { %v434_v49 = vsub.f32 %v432_v46, %v433_v47  ;;  %v439_v50 = vmul.f32 %v438_v48, %v404_v18 }
 0x3ff   :  { %v443_v51 = vrot.slane %v434_v49, %v1021_v43 }
 0x401   :  { %v444_v52 = vadd.f32 %v443_v51, %v439_v50 }
 0x403   :  { %v445_v53 = vmax.f32 %v444_v52, 0.0 }
 0x405   :  { %v446_v54 = vpack.c.bf16 %v445_v53, %v445_v53 }
 0x407   :  { %447 = vst.msk [vmem:[#allocation2] sm:$0xf] %vm201_vm4, %v446_v54 }
 0x408   :  { %468 = vst.msk [vmem:[#allocation2] sm:$0xf] %vm223_vm5, %v466_v55 }
 0x40f   :  { %v469_v56 = vld [vmem:[#allocation2] sm:$0xf] }
 0x410   :  { %871 = vmatmul.mubr.msk.bf16.vlgmr.msra.gmra.mrb[8].mxu1 %vm263_vm6, %v469_v56 }
 0x4e3   :  { %v544_v60 = vpop.f32.mrb[8].mxu1 }
 0x4e4   :  { %v545_v61 = vadd.f32 %v791_v59, %v544_v60  ;;  %v872_v62 = vpop.f32.mrb[9].mxu1 }
 0x4e5   :  { %v547_v63 = vpop.f32.mrb[10].mxu1  ;;  %v673_v62 = vld [vmem:[%s1174_s3 + $0xb] sm:$0x1] }
 0x4e6   :  { %v550_v0 = vsel %vm81_vm3, %v545_v61, 0.0  ;;  %v557_v1 = vmul.f32 %v545_v61, %v545_v61  ;;  %v873_v3 = vpop.f32.mrb[11].mxu1 }
 0x4e7   :  { %v551_v4 = vrot.slane %v550_v0, 4 }
 0x4e8   :  { %v558_v5 = vsel %vm81_vm3, %v557_v1, 0.0  ;;  %v675_v1 = vld [vmem:[%s1174_s3 + $0x12] sm:$0x1] }
 0x4e9   :  { %v552_v6 = vadd.f32 %v551_v4, %v550_v0  ;;  %v559_v7 = vrot.slane %v558_v5, 4 }
 0x4eb   :  { %v553_v8 = vrot.slane %v552_v6, 2  ;;  %v560_v9 = vadd.f32 %v559_v7, %v558_v5 }
 0x4ed   :  { %v554_v10 = vadd.f32 %v553_v8, %v552_v6  ;;  %v561_v11 = vrot.slane %v560_v9, 2 }
 0x4ef   :  { %v555_v12 = vrot.slane %v554_v10, 1  ;;  %v562_v13 = vadd.f32 %v561_v11, %v560_v9  ;;  %v801_v11 = vld [vmem:[%s1174_s3 + $0x13] ss:$0 sm:$0xff] }
 0x4f1   :  { %v556_v14 = vadd.f32 %v555_v12, %v554_v10  ;;  %v563_v15 = vrot.slane %v562_v13, 1 }
 0x4f3   :  { %v564_v16 = vadd.f32 %v563_v15, %v562_v13  ;;  %v565_v17 = vmul.f32 0.125, %v556_v14 }
 0x4f5   :  { %v566_v18 = vmul.f32 0.125, %v564_v16  ;;  %v567_v19 = vmul.f32 %v565_v17, %v565_v17 }
 0x4f7   :  { %v568_v20 = vsub.f32 %v566_v18, %v567_v19 }
 0x4f9   :  { %v569_v21 = vadd.f32 1e-05, %v568_v20 }
 0x4fb   :  { %920 = vrsqrt.f32 %v569_v21 }
 0x505   :  { %v921_v23 = vpop.eup %920 }
 0x506   :  { %v572_v24 = vmul.f32 %v921_v23, %v571_v22 }
 0x508   :  { %v574_v26 = vmul.f32 %v572_v24, %v565_v17  ;;  %v579_v27 = vrot.slane %v572_v24, %v1021_v43 }
 0x50a   :  { %v575_v28 = vsub.f32 %v573_v25, %v574_v26  ;;  %v580_v29 = vmul.f32 %v579_v27, %v545_v61 }
 0x50c   :  { %v584_v30 = vrot.slane %v575_v28, %v1021_v43 }
 0x50e   :  { %v585_v31 = vadd.f32 %v584_v30, %v580_v29 }
 0x510   :  { %v586_v32 = vmax.f32 %v585_v31, 0.0 }
 0x512   :  { %v587_v33 = vpack.c.bf16 %v586_v32, %v586_v32 }
 0x514   :  { %879 = vmatmul.mubr.msk.bf16.vlgmr.msra.gmra.mrb[8].mxu0 %vm81_vm3, %v587_v33 }
 0x515   :  { %886 = vmatprep.mubr.msk.bf16.mxu0 %vm950_vm0, %v949_v2  ;;  %883 = vmatpush3.bf16.msra.mxu0 %v910_v34 }
 0x516   :  { %884 = vmatprep.subr.bf16.mxu0 %v949_v2 }
 0x519   :  { %885 = vmatpush3.bf16.msra.mxu0 %v911_v35 }
 0x5e7   :  { %v646_v37 = vpop.f32.mrb[8].mxu0 }
 0x5e8   :  { %v647_v38 = vadd.f32 %v797_v36, %v646_v37  ;;  %v880_v39 = vpop.f32.mrb[9].mxu0 }
 0x5e9   :  { %v649_v40 = vpop.f32.mrb[10].mxu0 }
 0x5ea   :  { %v652_v41 = vsel %vm81_vm3, %v647_v38, 0.0  ;;  %v659_v42 = vmul.f32 %v647_v38, %v647_v38  ;;  %v881_v44 = vpop.f32.mrb[11].mxu0 }
 0x5eb   :  { %v653_v45 = vrot.slane %v652_v41, 4 }
 0x5ec   :  { %v660_v2 = vsel %vm81_vm3, %v659_v42, 0.0 }
 0x5ed   :  { %v654_v46 = vadd.f32 %v653_v45, %v652_v41  ;;  %v661_v47 = vrot.slane %v660_v2, 4 }
 0x5ef   :  { %v655_v48 = vrot.slane %v654_v46, 2  ;;  %v662_v49 = vadd.f32 %v661_v47, %v660_v2 }
 0x5f1   :  { %v656_v50 = vadd.f32 %v655_v48, %v654_v46  ;;  %v663_v51 = vrot.slane %v662_v49, 2 }
 0x5f3   :  { %v657_v52 = vrot.slane %v656_v50, 1  ;;  %v664_v53 = vadd.f32 %v663_v51, %v662_v49 }
 0x5f5   :  { %v658_v54 = vadd.f32 %v657_v52, %v656_v50  ;;  %v665_v55 = vrot.slane %v664_v53, 1 }
 0x5f7   :  { %v666_v56 = vadd.f32 %v665_v55, %v664_v53  ;;  %v667_v57 = vmul.f32 0.125, %v658_v54 }
 0x5f9   :  { %v668_v58 = vmul.f32 0.125, %v666_v56  ;;  %v669_v59 = vmul.f32 %v667_v57, %v667_v57 }
 0x5fb   :  { %v670_v60 = vsub.f32 %v668_v58, %v669_v59 }
 0x5fd   :  { %v671_v61 = vadd.f32 1e-05, %v670_v60 }
 0x5ff   :  { %922 = vrsqrt.f32 %v671_v61 }
 0x609   :  { %v923_v63 = vpop.eup %922 }
 0x60a   :  { %v674_v0 = vmul.f32 %v923_v63, %v673_v62 }
 0x60c   :  { %v676_v3 = vmul.f32 %v674_v0, %v667_v57  ;;  %v681_v4 = vrot.slane %v674_v0, %v1021_v43 }
 0x60e   :  { %v677_v5 = vsub.f32 %v675_v1, %v676_v3  ;;  %v682_v6 = vmul.f32 %v681_v4, %v647_v38 }
 0x610   :  { %v686_v7 = vrot.slane %v677_v5, %v1021_v43 }
 0x612   :  { %v687_v8 = vadd.f32 %v686_v7, %v682_v6 }
 0x614   :  { %v688_v9 = vmax.f32 %v687_v8, 0.0 }
 0x616   :  { %v689_v10 = vpack.c.bf16 %v688_v9, %v688_v9 }
 0x618   :  { %887 = vmatmul.mubr.msk.bf16.vlgmr.msra.gmra.mrb[12].mxu0 %vm81_vm3, %v689_v10 }
 0x6eb   :  { %v748_v12 = vpop.f32.mrb[12].mxu0 }
 0x6ec   :  { %v749_v13 = vadd.f32 %v801_v11, %v748_v12  ;;  %v888_v14 = vpop.f32.mrb[13].mxu0 }
 0x6ed   :  { %v751_v15 = vpop.f32.mrb[14].mxu0 }
 0x6ee   :  { %754 = vst.msk [vmem:[#allocation3] sm:$0xff] %vm37_vm1, %v749_v13  ;;  %v889_v16 = vpop.f32.mrb[15].mxu0 }
 0x6ef   :  { %935 = shalt.err (!%p932_p4)
}
 0x6f0   :  { %s936_s3 = scalar_lea.hbm %s1175_s4, 128 }
 0x6f1   :  { %p937_p5 = scmp.ne.s32.totalorder %s1175_s4, %s936_s3  ;;  %p940_p6 = scmp.lt.u32.totalorder %s936_s3, %s1175_s4 }
 0x6f3   :  { %p942_p7 = pnand %p940_p6, %p937_p5 }
 0x6f5   :  { %945 = shalt.err (!%p942_p7)
}
 0x6f6   :  { %764 = dma.vmem_to_hbm [thread:$0]  %s762_s8, 128, %s1175_s4, [#allocation4]  }
 0x6f7   :  { %946 = dma.done.wait [#allocation4], 128  }
 0x6f8   :  { %947 = vsyncadd [#allocation4], 4294967168 }
 0x6f9   :  { %768 = vsyncpa [#allocation4], 1 }

</bundles_post_ra>
